<compile_context>
chip_gen: v7x
topology: tpu7x:2x2x1
jax: 0.10.0
libtpu: 0.0.40
codegen_flags: <defaults>
</compile_context>

<pallas_src>
import functools

import jax
import jax.numpy as jnp
from jax.experimental import pallas as pl
from jax.experimental.pallas import tpu as pltpu

_LANE = 128
_SUBLANE = 8


def _ceil_to(v, m):
    return ((v + m - 1) // m) * m


def _bias_kernel(x_ref, rb_ref, o_ref, *, levels):
    # rb_ref: (tile_r, 1) — broadcast across lanes on the VPU.
    o_ref[...] = x_ref[...] + (rb_ref[...] - 2.0) / levels


def _full_kernel(x_ref, rb_ref, o_ref, *, levels):
    # round_bits varies spatially: full-size second operand.
    o_ref[...] = x_ref[...] + (rb_ref[...] - 2.0) / levels


def round_dequantize(x, round_bits, levels=4):
    """Pallas TPU implementation of RoundDequantizer.forward.

    x:          f32[N, C, H, W]
    round_bits: broadcastable to x (scalar, per-channel, or full shape)
    returns:    f32[N, C, H, W] = (round_bits - 2) / levels + x
    """
    x = jnp.asarray(x, jnp.float32)
    rb = jnp.asarray(round_bits, jnp.float32)
    n, c, h, w = x.shape
    rows, cols = n * c, h * w

    # Tile sizes: lane-dense columns (multiple of 128), sublane-aligned rows.
    tile_r = min(_ceil_to(rows, _SUBLANE), 256)
    tile_c = min(_ceil_to(cols, _LANE), 1024)
    rows_p = _ceil_to(rows, tile_r)
    cols_p = _ceil_to(cols, tile_c)
    grid = (rows_p // tile_r, cols_p // tile_c)

    x2 = x.reshape(rows, cols)
    if (rows_p, cols_p) != (rows, cols):
        x2 = jnp.pad(x2, ((0, rows_p - rows), (0, cols_p - cols)))

    # Common case (scalar / per-channel round_bits): represent it as one value
    # per (n, c) row and broadcast it in-kernel — avoids streaming a second
    # full-size slab from HBM.
    try:
        rb_rows = jnp.broadcast_to(rb, (n, c, 1, 1)).reshape(rows, 1)
        per_row = True
    except ValueError:
        per_row = False

    levels = float(levels)
    cparams = pltpu.CompilerParams(
        dimension_semantics=("parallel", "parallel"))

    if per_row:
        if rows_p != rows:
            rb_rows = jnp.pad(rb_rows, ((0, rows_p - rows), (0, 0)))
        out_p = pl.pallas_call(
            functools.partial(_bias_kernel, levels=levels),
            out_shape=jax.ShapeDtypeStruct((rows_p, cols_p), jnp.float32),
            grid=grid,
            in_specs=[
                pl.BlockSpec((tile_r, tile_c), lambda i, j: (i, j)),
                pl.BlockSpec((tile_r, 1), lambda i, j: (i, 0)),
            ],
            out_specs=pl.BlockSpec((tile_r, tile_c), lambda i, j: (i, j)),
            compiler_params=cparams,
        )(x2, rb_rows)
    else:
        # round_bits varies spatially: stream it at full size alongside x.
        rb2 = jnp.broadcast_to(rb, x.shape).reshape(rows, cols)
        if (rows_p, cols_p) != (rows, cols):
            rb2 = jnp.pad(rb2, ((0, rows_p - rows), (0, cols_p - cols)))
        out_p = pl.pallas_call(
            functools.partial(_full_kernel, levels=levels),
            out_shape=jax.ShapeDtypeStruct((rows_p, cols_p), jnp.float32),
            grid=grid,
            in_specs=[
                pl.BlockSpec((tile_r, tile_c), lambda i, j: (i, j)),
                pl.BlockSpec((tile_r, tile_c), lambda i, j: (i, j)),
            ],
            out_specs=pl.BlockSpec((tile_r, tile_c), lambda i, j: (i, j)),
            compiler_params=cparams,
        )(x2, rb2)

    return out_p[:rows, :cols].reshape(n, c, h, w)


if __name__ == "__main__":
    key = jax.random.PRNGKey(0)
    kx, kr, kx2, kr2 = jax.random.split(key, 4)
    levels = 4

    # 1) Per-channel round_bits (fast per-row-bias path), lane-aligned H*W.
    x = jax.random.normal(kx, (2, 4, 16, 16), dtype=jnp.float32)
    round_bits = jax.random.randint(kr, (2, 4, 1, 1), 0, 8).astype(jnp.float32)
    out = jax.block_until_ready(round_dequantize(x, round_bits, levels=levels))
    ref = (round_bits - 2.0) / levels + x
    assert out.shape == x.shape and out.dtype == x.dtype
    assert jnp.allclose(out, ref, atol=1e-6, rtol=1e-6)

    # 2) Scalar round_bits with H*W not a multiple of 128 (exercises padding).
    x_b = jax.random.normal(kx2, (2, 4, 7, 7), dtype=jnp.float32)
    rb_b = jnp.float32(5.0)
    out_b = jax.block_until_ready(round_dequantize(x_b, rb_b, levels=levels))
    ref_b = (rb_b - 2.0) / levels + x_b
    assert jnp.allclose(out_b, ref_b, atol=1e-6, rtol=1e-6)

    # 3) Full-shape round_bits (general two-slab path).
    rb_c = jax.random.randint(kr2, (2, 4, 16, 16), 0, 8).astype(jnp.float32)
    out_c = jax.block_until_ready(round_dequantize(x, rb_c, levels=levels))
    ref_c = (rb_c - 2.0) / levels + x
    assert jnp.allclose(out_c, ref_c, atol=1e-6, rtol=1e-6)

    print("KERNEL_OK")
</pallas_src>

<mosaic_0001>
module attributes {stable_mosaic.version = 11 : i64} {
  func.func @_bias_kernel(%arg0: i32, %arg1: i32, %arg2: memref<8x256xf32, #tpu.memory_space<vmem>>, %arg3: memref<8x1xf32, #tpu.memory_space<vmem>>, %arg4: memref<8x256xf32, #tpu.memory_space<vmem>>) attributes {dimension_semantics = [#tpu.dimension_semantics<parallel>, #tpu.dimension_semantics<parallel>], iteration_bounds = array<i64: 1, 1>, scalar_prefetch = 0 : i64, scratch_operands = 0 : i64, tpu.core_type = #tpu.core_type<tc>, window_params = [{transform_indices = @transform_0, window_bounds = array<i64: 8, 256>}, {transform_indices = @transform_1, window_bounds = array<i64: 8, 1>}, {transform_indices = @transform_2, window_bounds = array<i64: 8, 256>}]} {
    %c0 = arith.constant 0 : index
    %c0_0 = arith.constant 0 : index
    %0 = vector.load %arg2[%c0, %c0_0] : memref<8x256xf32, #tpu.memory_space<vmem>>, vector<8x256xf32>
    %c0_1 = arith.constant 0 : index
    %c0_2 = arith.constant 0 : index
    %1 = vector.load %arg3[%c0_1, %c0_2] : memref<8x1xf32, #tpu.memory_space<vmem>>, vector<8x1xf32>
    %cst = arith.constant 2.000000e+00 : f32
    %2 = vector.broadcast %cst : f32 to vector<8x1xf32>
    %3 = arith.subf %1, %2 : vector<8x1xf32>
    %cst_3 = arith.constant 4.000000e+00 : f32
    %4 = vector.broadcast %cst_3 : f32 to vector<8x1xf32>
    %5 = arith.divf %3, %4 : vector<8x1xf32>
    %6 = vector.broadcast %5 : vector<8x1xf32> to vector<8x256xf32>
    %7 = arith.addf %0, %6 : vector<8x256xf32>
    %c0_4 = arith.constant 0 : index
    %c0_5 = arith.constant 0 : index
    %8 = vector.load %arg4[%c0_4, %c0_5] : memref<8x256xf32, #tpu.memory_space<vmem>>, vector<8x256xf32>
    tpu.vector_store %arg4[%c0_4, %c0_5], %7 {strides = array<i32>} : memref<8x256xf32, #tpu.memory_space<vmem>>, vector<8x256xf32>,
    return
  }
  func.func @transform_0(%arg0: i32, %arg1: i32) -> (i32, i32) {
    %c0_i32 = arith.constant 0 : i32
    return %arg0, %arg1 : i32, i32
  }
  func.func @transform_1(%arg0: i32, %arg1: i32) -> (i32, i32) {
    %c0_i32 = arith.constant 0 : i32
    %c0_i32_0 = arith.constant 0 : i32
    return %arg0, %c0_i32 : i32, i32
  }
  func.func @transform_2(%arg0: i32, %arg1: i32) -> (i32, i32) {
    %c0_i32 = arith.constant 0 : i32
    return %arg0, %arg1 : i32, i32
  }
}

</mosaic_0001>

<bundles_post_ra>
// kernel: tpu_custom_call.1
= control target key start
LH: loop header
LB: loop body
LE: loop exit
PB: predicated region body
PF: predicated region fallthrough
CT: control target
= control target key end

     0   :  { %7 = vsyncpa [#allocation3], 0  ;;  %s152_s0 = inlined_call_operand.hbm [shape: f32[8,256], index: 0, kind: input, shape index: {}]   ;;  %s153_s1 = inlined_call_operand.vmem [shape: f32[8,1], index: 1, kind: input, shape index: {}]   ;;  %s154_s2 = inlined_call_operand.hbm [shape: f32[8,256], index: 2, kind: output, shape index: {}]  }
   0x1   :  { %8 = vsyncpa [#allocation4], 0  ;;  %s107_s9 = smov [#allocation2]   ;;  %s59_s13 = scalar_lea.hbm %s152_s0, 256 }
   0x2   :  { %s15_s10 = sshll.u32 %s107_s9, 4  ;;  %p60_p0 = scmp.ne.s32.totalorder %s152_s0, %s59_s13  ;;  %s16_s10 = int_to_ptr.vmem [resolvable:$true] %s15_s10 }
   0x3   :  { %p63_p1 = scmp.lt.u32.totalorder %s59_s13, %s152_s0 }
   0x5   :  { %p65_p2 = pnand %p63_p1, %p60_p0 }
   0x7   :  { %68 = shalt.err (!%p65_p2)
}
   0x8   :  { %s69_s18 = scalar_lea.vmem %s16_s10, 256  ;;  %p74_p4 = scmp.lt.s32.totalorder %s16_s10, %s16_s10 }
   0x9   :  { %p70_p3 = scmp.ne.s32.totalorder %s16_s10, %s69_s18  ;;  %p75_p5 = scmp.lt.s32.totalorder %s69_s18, %s69_s18 }
   0xb   :  { %p76_p6 = por %p75_p5, %p74_p4 }
   0xd   :  { %p77_p7 = pnand %p76_p6, %p70_p3 }
   0xf   :  { %80 = shalt.err (!%p77_p7)
}
  0x10   :  { %18 = dma.hbm_to_vmem [thread:$0]  %s152_s0, 256, %s16_s10, [#allocation3]  }
  0x11   :  { %103 = dma.done.wait [#allocation3], 256  }
  0x12   :  { %104 = vsyncadd [#allocation3], 4294967040  ;;  %v108_v0 = vmov 0   ;;  %v26_v1 = vld [vmem:[%s153_s1] sm:$0xff]  ;;  %v25_v5 = vld [vmem:[#allocation2 + $0x8] sm:$0xff]  ;;  %s109_s23 = smov [#allocation5]  }
  0x13   :  { %58 = vset.pattern.permute.xlu0 %v108_v0  ;;  %v54_v2 = vadd.f32 -2.0, %v26_v1  ;;  %v24_v4 = vld [vmem:[#allocation2] sm:$0xff]  ;;  %s45_s24 = sshll.u32 %s109_s23, 4  ;;  %s46_s24 = int_to_ptr.vmem [resolvable:$true] %s45_s24 }
  0x14   :  { %s81_s0 = scalar_lea.vmem %s46_s24, 256  ;;  %p86_p9 = scmp.lt.s32.totalorder %s46_s24, %s46_s24 }
  0x15   :  { %v29_v3 = vmul.f32 0.25, %v54_v2  ;;  %p82_p8 = scmp.ne.s32.totalorder %s46_s24, %s81_s0  ;;  %p87_p10 = scmp.lt.s32.totalorder %s81_s0, %s81_s0 }
  0x17   :  { %32 = vperm.xlu0 %58, %v29_v3   ;;  %p88_p11 = por %p87_p10, %p86_p9 }
  0x19   :  { %p89_p12 = pnand %p88_p11, %p82_p8 }
  0x96   :  { %v33_v6 = vpop.permute.xlu0 %32 }
  0x97   :  { %v35_v7 = vadd.f32 %v33_v6, %v24_v4  ;;  %v36_v8 = vadd.f32 %v33_v6, %v25_v5 }
  0x99   :  { %37 = vst [vmem:[#allocation5] sm:$0xff] %v35_v7  ;;  %38 = vst [vmem:[#allocation5 + $0x8] sm:$0xff] %v36_v8 }
  0x9a   :  { %92 = shalt.err (!%p89_p12)
}
  0x9b   :  { %s93_s26 = scalar_lea.hbm %s154_s2, 256 }
  0x9c   :  { %p94_p13 = scmp.ne.s32.totalorder %s154_s2, %s93_s26  ;;  %p97_p0 = scmp.lt.u32.totalorder %s93_s26, %s154_s2 }
  0x9e   :  { %p99_p1 = pnand %p97_p0, %p94_p13 }
  0xa0   :  { %102 = shalt.err (!%p99_p1)
}
  0xa1   :  { %48 = dma.vmem_to_hbm [thread:$0]  %s46_s24, 256, %s154_s2, [#allocation4]  }
  0xa2   :  { %105 = dma.done.wait [#allocation4], 256  }
  0xa3   :  { %106 = vsyncadd [#allocation4], 4294967040 }
  0xa4   :  { %52 = vsyncpa [#allocation3], 1 }
  0xa5   :  { %53 = vsyncpa [#allocation4], 1 }

</bundles_post_ra>
